<compile_context>
chip_gen: v7x
topology: tpu7x:2x2x1
jax: 0.10.0
libtpu: 0.0.40
codegen_flags: <defaults>
</compile_context>

<pallas_src>
import functools

import jax
import jax.numpy as jnp
from jax.experimental import pallas as pl
from jax.experimental.pallas import tpu as pltpu


# ----------------------------- Pallas kernel --------------------------------


def _make_detect_kernel(emit_raw):
    """Fused 1x1-conv + sigmoid + YOLO box decode, lane-dense over space."""

    def kernel(w_ref, c_ref, g_ref, x_ref, *out_refs):
        if emit_raw:
            raw_ref, dec_ref = out_refs
        else:
            (dec_ref,) = out_refs

        # 1x1 conv as (nano, C) @ (C, tn) on the MXU (bf16 inputs, f32 acc).
        conv = jnp.dot(w_ref[...], x_ref[...],
                       preferred_element_type=jnp.float32)
        conv = conv + c_ref[:, 3:4]                       # + bias
        if emit_raw:
            raw_ref[...] = conv.astype(raw_ref.dtype)     # pre-sigmoid x[i]

        t = jnp.tanh(conv * 0.5)                          # one EUP op / element

        # gamma[r, s] = stride*sel_gx[r]*(gx[s]-0.5) + stride*sel_gy[r]*(gy[s]-0.5)
        # Done as a tiny MXU matmul against the precomputed grid table so it
        # stays off the (binding) VALU slots.  Products are exact: stride and
        # small grid offsets are exactly representable even in bf16 passes.
        gamma = jnp.dot(c_ref[...], g_ref[...],
                        preferred_element_type=jnp.float32)

        a2 = c_ref[:, 4:5]        # coeff of t
        b2 = c_ref[:, 5:6]        # coeff of t^2
        c2 = c_ref[:, 6:7]        # per-row constant (exact f32 add on the VPU)
        dec_ref[...] = (t * (a2 + b2 * t) + (gamma + c2)).astype(dec_ref.dtype)

    return kernel


# ------------------------- per-chip tiling helpers ---------------------------


def _chip_budgets():
    """(tile_cap, vmem_limit_bytes, small_vmem_chip) tuned per TPU generation."""
    cap, vmem_limit, small_vmem = 2048, 32 * 1024 * 1024, False   # safe default
    try:  # trace-time hardware query; fall back to conservative defaults.
        phys = getattr(pltpu.get_tpu_info(), "vmem_capacity_bytes", 0)
        if phys >= 100 * 1024 * 1024:          # v5e / v6e: 128 MiB physical
            cap, vmem_limit = 4096, 64 * 1024 * 1024
        elif phys > 0:                         # v7x-class: 64 MiB physical / TC
            small_vmem = True
    except Exception:
        pass
    return cap, vmem_limit, small_vmem


def _pick_spatial_tile(S_pad, per_col_bytes, budget_bytes, cap, min_blocks=1):
    """Largest multiple-of-128 tile that divides S_pad, fits the per-step VMEM
    budget, respects `cap`, and yields at least `min_blocks` grid blocks."""
    limit = min(cap, S_pad,
                max(S_pad // max(min_blocks, 1), 128),
                max((budget_bytes // max(per_col_bytes, 1)) // 128 * 128, 128))
    limit = max(128, (limit // 128) * 128)
    best = 128                       # always divides (S_pad is a 128-multiple)
    t = 256
    while t <= limit:
        if S_pad % t == 0:
            best = t
        t += 128
    return best


# ------------------------------ one level ------------------------------------


def detect_layer(x_nchw, w, b, anchors_i, stride, na, no, *,
                 compute_dtype=jnp.bfloat16, emit_raw=True, raw_dtype=None):
    """One detection level.

    Args:
      x_nchw:    (bs, C, ny, nx) feature map (NCHW, as PyTorch).
      w:         (na*no, C) 1x1-conv weight (PyTorch (out, in, 1, 1) squeezed).
      b:         (na*no,) conv bias.
      anchors_i: (na, 2) anchors for this level.
      stride:    python float stride for this level.
      compute_dtype: dtype of the conv inputs on the MXU (bf16 halves input DMA;
                 accumulation is always f32).
      emit_raw:  also produce the permuted pre-sigmoid conv output (`x[i]`).
      raw_dtype: storage dtype of the raw output (default: compute_dtype).
    Returns:
      raw:     (bs, na, ny, nx, no) or None  -- the permuted conv output x[i]
      decoded: (bs, na*ny*nx, no)            -- this level's contribution to z
    """
    bs, C, ny, nx = x_nchw.shape
    S = ny * nx
    nano = na * no
    nano_p = -(-nano // 8) * 8            # sublane-pad output rows
    S_pad = -(-S // 128) * 128            # lane-pad space: all stores full-width
    raw_dtype = compute_dtype if raw_dtype is None else raw_dtype

    # Lane-dense input view (free reshape, no transpose), zero-padded in space.
    x3 = x_nchw.reshape(bs, C, S).astype(compute_dtype)
    if S_pad != S:
        x3 = jnp.pad(x3, ((0, 0), (0, 0), (0, S_pad - S)))

    w_p = jnp.pad(w.astype(compute_dtype), ((0, nano_p - nano), (0, 0)))

    # ---- per-output-row constants (host side, resident in VMEM) ------------
    # columns: [sel_gx*stride, sel_gy*stride, 0, bias, a2, b2, c2, 0]
    c_idx = jnp.arange(nano) % no
    a_idx = jnp.arange(nano) // no
    sel_gx = (c_idx == 0).astype(jnp.float32)
    sel_gy = (c_idx == 1).astype(jnp.float32)
    sel_xy = (c_idx < 2).astype(jnp.float32)
    sel_wh = ((c_idx >= 2) & (c_idx < 4)).astype(jnp.float32)
    anc_w = anchors_i[a_idx, 0] * stride
    anc_h = anchors_i[a_idx, 1] * stride
    amul = jnp.where(c_idx == 2, anc_w, jnp.where(c_idx == 3, anc_h, 0.0))
    alpha = 2.0 * stride * sel_xy + (1.0 - sel_xy - sel_wh)   # coeff of sigmoid
    beta = 4.0 * amul                                         # coeff of sigmoid^2
    a2 = 0.5 * (alpha + beta)           # coeff of t   (t = tanh(conv/2))
    b2 = 0.25 * beta                    # coeff of t^2
    c2 = 0.5 * alpha + 0.25 * beta      # per-row constant term
    zeros = jnp.zeros_like(a2)
    rowc = jnp.stack([sel_gx * stride, sel_gy * stride, zeros,
                      b.astype(jnp.float32), a2, b2, c2, zeros], axis=1)
    rowc = jnp.pad(rowc, ((0, nano_p - nano), (0, 0)))        # (nano_p, 8)

    # ---- spatial grid table (8, S_pad): rows [(gx-0.5), (gy-0.5), 0, ...] ---
    s_idx = jnp.arange(S_pad)
    gxs = (s_idx % nx).astype(jnp.float32) - 0.5
    gys = (s_idx // nx).astype(jnp.float32) - 0.5
    gtab = jnp.zeros((8, S_pad), jnp.float32).at[0].set(gxs).at[1].set(gys)

    # ---- per-chip tile / VMEM budgets ---------------------------------------
    cap, vmem_limit, small_vmem = _chip_budgets()
    in_b = jnp.dtype(compute_dtype).itemsize
    raw_b = jnp.dtype(raw_dtype).itemsize if emit_raw else 0
    per_col = 2 * (C * in_b + 8 * 4 + nano_p * (4 + raw_b))   # double-buffered
    resident = 2 * nano_p * (C * in_b + 8 * 4)                # weights + rowc
    budget = max(vmem_limit - resident - (2 << 20), 1 << 20)
    # On a 2-TensorCore chip (v7x), make sure bs==1 still yields >=2 parallel
    # blocks so both cores get work.
    min_blocks = 2 if (small_vmem and bs == 1 and S_pad >= 256) else 1
    tn = _pick_spatial_tile(S_pad, per_col, budget, cap, min_blocks)
    grid = (bs, S_pad // tn)

    out_shape = [jax.ShapeDtypeStruct((bs, nano_p, S_pad), jnp.float32)]
    out_specs = [pl.BlockSpec((None, nano_p, tn), lambda bb, j: (bb, 0, j))]
    if emit_raw:
        out_shape.insert(0, jax.ShapeDtypeStruct((bs, nano_p, S_pad), raw_dtype))
        out_specs.insert(0, pl.BlockSpec((None, nano_p, tn),
                                         lambda bb, j: (bb, 0, j)))

    outs = pl.pallas_call(
        _make_detect_kernel(emit_raw),
        out_shape=tuple(out_shape),
        grid=grid,
        in_specs=[
            pl.BlockSpec((nano_p, C), lambda bb, j: (0, 0)),      # weights
            pl.BlockSpec((nano_p, 8), lambda bb, j: (0, 0)),      # row constants
            pl.BlockSpec((8, tn), lambda bb, j: (0, j)),          # grid table
            # If profiling shows exposed input DMA on v5e (low HBM BW), add
            # pipeline_mode=pl.Buffered(3) to this spec.
            pl.BlockSpec((None, C, tn), lambda bb, j: (bb, 0, j)),  # input slab
        ],
        out_specs=tuple(out_specs),
        compiler_params=pltpu.CompilerParams(
            dimension_semantics=("parallel", "parallel"),
            vmem_limit_bytes=vmem_limit),
    )(w_p, rowc, gtab, x3)

    dec = outs[-1][:, :nano, :S]
    # TODO(synk): this no-last transpose re-materializes dec in HBM; if the
    # consumer (e.g. NMS) can read the lane-dense (na*no, S) layout, fuse it
    # there instead of paying the extra round-trip here.
    dec_r = dec.reshape(bs, na, no, S).transpose(0, 1, 3, 2).reshape(bs, na * S, no)
    raw_r = None
    if emit_raw:
        raw = outs[0][:, :nano, :S]
        raw_r = raw.reshape(bs, na, no, ny, nx).transpose(0, 1, 3, 4, 2)
    return raw_r, dec_r


def detect_forward(xs, weights, biases, anchors, strides, na, no,
                   compute_dtype=jnp.bfloat16, raw_dtype=None):
    """Inference-mode Detect.forward: returns (cat(z, 1), [x0, x1, ...]).

    (Training mode in the PyTorch module returns only the raw list, which is
    the second element returned here.)
    """
    # TODO(synk): the three per-level pallas_calls could be fused into a single
    # flattened-grid call (PrefetchScalarGridSpec with per-level offsets); the
    # small stride-16/32 levels are launch-overhead dominated at inference.
    raws, zs = [], []
    for i, x in enumerate(xs):
        raw_i, dec_i = detect_layer(
            x, weights[i], biases[i], anchors[i], strides[i], na, no,
            compute_dtype=compute_dtype, emit_raw=True, raw_dtype=raw_dtype)
        raws.append(raw_i)
        zs.append(dec_i)
    return jnp.concatenate(zs, axis=1), raws


# ------------------------- pure-JAX reference --------------------------------


def detect_reference(xs, weights, biases, anchors, strides, na, no):
    zs, raws = [], []
    for i, x in enumerate(xs):
        bs, C, ny, nx = x.shape
        conv = jnp.einsum('bchw,oc->bohw', x, weights[i],
                          precision=jax.lax.Precision.HIGHEST) \
            + biases[i][None, :, None, None]
        xi = conv.reshape(bs, na, no, ny, nx).transpose(0, 1, 3, 4, 2)
        raws.append(xi)
        y = jax.nn.sigmoid(xi)
        gyv, gxv = jnp.meshgrid(jnp.arange(ny), jnp.arange(nx), indexing='ij')
        grid = jnp.stack((gxv, gyv), 2).astype(jnp.float32)[None, None]
        anchor_grid = (anchors[i] * strides[i]).reshape(1, na, 1, 1, 2)
        xy = (y[..., 0:2] * 2.0 - 0.5 + grid) * strides[i]
        wh = (y[..., 2:4] * 2.0) ** 2 * anchor_grid
        y = jnp.concatenate([xy, wh, y[..., 4:]], axis=-1)
        zs.append(y.reshape(bs, -1, no))
    return jnp.concatenate(zs, axis=1), raws


# --------------------------------- main --------------------------------------

if __name__ == "__main__":
    # Small, deterministic configuration (synthetic weights).
    nc = 3                     # number of classes
    no = nc + 5                # 8 outputs per anchor
    anchors_cfg = ((10, 13, 16, 30, 33, 23),
                   (30, 61, 62, 45, 59, 119),
                   (116, 90, 156, 198, 373, 326))
    nl = len(anchors_cfg)
    na = len(anchors_cfg[0]) // 2        # 3 anchors per level
    ch = (8, 16, 32)                     # input channels per level
    spatial = ((16, 16), (8, 8), (4, 4))  # (ny, nx) per level
    strides = (8.0, 16.0, 32.0)
    bs = 2

    anchors = jnp.asarray(anchors_cfg, dtype=jnp.float32).reshape(nl, na, 2)

    key = jax.random.PRNGKey(0)
    weights, biases, xs = [], [], []
    for i in range(nl):
        key, kw, kb, kx = jax.random.split(key, 4)
        C = ch[i]
        nano = na * no
        # nn.Conv2d(C, na*no, 1) weight (out, C, 1, 1) -> stored as (out, C).
        weights.append(jax.random.normal(kw, (nano, C), jnp.float32) * 0.05)
        biases.append(jax.random.normal(kb, (nano,), jnp.float32) * 0.1)
        ny, nx = spatial[i]
        xs.append(jax.random.normal(kx, (bs, C, ny, nx), jnp.float32))

    z_ref, raw_ref = detect_reference(xs, weights, biases, anchors, strides,
                                      na, no)

    # --- fast (deployment) path: bf16 conv inputs + bf16 raw output ----------
    fwd_fast = jax.jit(functools.partial(
        detect_forward, strides=strides, na=na, no=no,
        compute_dtype=jnp.bfloat16))
    z_fast, raw_fast = jax.block_until_ready(
        fwd_fast(xs, weights, biases, anchors))
    assert z_fast.shape == z_ref.shape, (z_fast.shape, z_ref.shape)
    assert jnp.allclose(z_fast, z_ref, rtol=5e-2, atol=5e-2)
    for r, rr in zip(raw_fast, raw_ref):
        assert r.shape == rr.shape, (r.shape, rr.shape)
        assert jnp.allclose(r.astype(jnp.float32), rr, rtol=5e-2, atol=5e-2)

    # --- exact path: f32 end-to-end (tight check of the decode algebra) ------
    fwd_f32 = jax.jit(functools.partial(
        detect_forward, strides=strides, na=na, no=no,
        compute_dtype=jnp.float32))
    z_f32, raw_f32 = jax.block_until_ready(
        fwd_f32(xs, weights, biases, anchors))
    assert z_f32.shape == z_ref.shape, (z_f32.shape, z_ref.shape)
    assert jnp.allclose(z_f32, z_ref, rtol=5e-3, atol=5e-3)
    for r, rr in zip(raw_f32, raw_ref):
        assert r.shape == rr.shape, (r.shape, rr.shape)
        assert jnp.allclose(r, rr, rtol=5e-3, atol=5e-3)

    print("KERNEL_OK")
</pallas_src>

<mosaic_0001>
module attributes {stable_mosaic.version = 11 : i64} {
  func.func @kernel(%arg0: i32, %arg1: i32, %arg2: memref<24x16xbf16, #tpu.memory_space<vmem>>, %arg3: memref<24x8xf32, #tpu.memory_space<vmem>>, %arg4: memref<8x128xf32, #tpu.memory_space<vmem>>, %arg5: memref<1x16x128xbf16, #tpu.memory_space<vmem>>, %arg6: memref<1x24x128xbf16, #tpu.memory_space<vmem>>, %arg7: memref<1x24x128xf32, #tpu.memory_space<vmem>>) attributes {dimension_semantics = [#tpu.dimension_semantics<parallel>, #tpu.dimension_semantics<parallel>], iteration_bounds = array<i64: 2, 1>, scalar_prefetch = 0 : i64, scratch_operands = 0 : i64, tpu.core_type = #tpu.core_type<tc>, window_params = [{pipeline_mode = #tpu.pipeline_mode<synchronous>, transform_indices = @transform_0, window_bounds = array<i64: 24, 16>}, {pipeline_mode = #tpu.pipeline_mode<synchronous>, transform_indices = @transform_1, window_bounds = array<i64: 24, 8>}, {transform_indices = @transform_2, window_bounds = array<i64: 8, 128>}, {transform_indices = @transform_3, window_bounds = array<i64: 1, 16, 128>}, {transform_indices = @transform_4, window_bounds = array<i64: 1, 24, 128>}, {transform_indices = @transform_5, window_bounds = array<i64: 1, 24, 128>}]} {
    %c0 = arith.constant 0 : index
    %c0_0 = arith.constant 0 : index
    %0 = vector.load %arg2[%c0, %c0_0] : memref<24x16xbf16, #tpu.memory_space<vmem>>, vector<24x16xbf16>
    %c0_1 = arith.constant 0 : index
    %c0_2 = arith.constant 0 : index
    %c0_3 = arith.constant 0 : index
    %1 = vector.load %arg5[%c0_1, %c0_2, %c0_3] : memref<1x16x128xbf16, #tpu.memory_space<vmem>>, vector<1x16x128xbf16>
    %2 = vector.shape_cast %1 : vector<1x16x128xbf16> to vector<16x128xbf16>
    %cst = arith.constant dense<0.000000e+00> : vector<24x128xf32>
    %3 = tpu.matmul %0, %2, %cst {dimension_numbers = #tpu.dot_dimension_numbers<[1], [0], [0], [1], [0, 0, 1, 1], [], []>} : vector<24x16xbf16>, vector<16x128xbf16>, vector<24x128xf32> -> vector<24x128xf32>
    %c0_4 = arith.constant 0 : index
    %c3 = arith.constant 3 : index
    %4 = vector.load %arg3[%c0_4, %c3] : memref<24x8xf32, #tpu.memory_space<vmem>>, vector<24x1xf32>
    %5 = vector.broadcast %4 : vector<24x1xf32> to vector<24x128xf32>
    %6 = arith.addf %3, %5 : vector<24x128xf32>
    %7 = arith.truncf %6 : vector<24x128xf32> to vector<24x128xbf16>
    %c0_5 = arith.constant 0 : index
    %c0_6 = arith.constant 0 : index
    %c0_7 = arith.constant 0 : index
    %8 = vector.load %arg6[%c0_5, %c0_6, %c0_7] : memref<1x24x128xbf16, #tpu.memory_space<vmem>>, vector<1x24x128xbf16>
    %9 = vector.shape_cast %8 : vector<1x24x128xbf16> to vector<24x128xbf16>
    %10 = vector.shape_cast %7 : vector<24x128xbf16> to vector<1x24x128xbf16>
    tpu.vector_store %arg6[%c0_5, %c0_6, %c0_7], %10 {strides = array<i32>} : memref<1x24x128xbf16, #tpu.memory_space<vmem>>, vector<1x24x128xbf16>,
    %cst_8 = arith.constant 5.000000e-01 : f32
    %11 = vector.broadcast %cst_8 : f32 to vector<24x128xf32>
    %12 = arith.mulf %6, %11 : vector<24x128xf32>
    %13 = math.tanh %12 : vector<24x128xf32>
    %c0_9 = arith.constant 0 : index
    %c0_10 = arith.constant 0 : index
    %14 = vector.load %arg3[%c0_9, %c0_10] : memref<24x8xf32, #tpu.memory_space<vmem>>, vector<24x8xf32>
    %c0_11 = arith.constant 0 : index
    %c0_12 = arith.constant 0 : index
    %15 = vector.load %arg4[%c0_11, %c0_12] : memref<8x128xf32, #tpu.memory_space<vmem>>, vector<8x128xf32>
    %cst_13 = arith.constant dense<0.000000e+00> : vector<24x128xf32>
    %16 = tpu.matmul %14, %15, %cst_13 {dimension_numbers = #tpu.dot_dimension_numbers<[1], [0], [0], [1], [0, 0, 1, 1], [], []>} : vector<24x8xf32>, vector<8x128xf32>, vector<24x128xf32> -> vector<24x128xf32>
    %c0_14 = arith.constant 0 : index
    %c4 = arith.constant 4 : index
    %17 = vector.load %arg3[%c0_14, %c4] : memref<24x8xf32, #tpu.memory_space<vmem>>, vector<24x1xf32>
    %c0_15 = arith.constant 0 : index
    %c5 = arith.constant 5 : index
    %18 = vector.load %arg3[%c0_15, %c5] : memref<24x8xf32, #tpu.memory_space<vmem>>, vector<24x1xf32>
    %c0_16 = arith.constant 0 : index
    %c6 = arith.constant 6 : index
    %19 = vector.load %arg3[%c0_16, %c6] : memref<24x8xf32, #tpu.memory_space<vmem>>, vector<24x1xf32>
    %20 = vector.broadcast %18 : vector<24x1xf32> to vector<24x128xf32>
    %21 = arith.mulf %20, %13 : vector<24x128xf32>
    %22 = vector.broadcast %17 : vector<24x1xf32> to vector<24x128xf32>
    %23 = arith.addf %22, %21 : vector<24x128xf32>
    %24 = arith.mulf %13, %23 : vector<24x128xf32>
    %25 = vector.broadcast %19 : vector<24x1xf32> to vector<24x128xf32>
    %26 = arith.addf %16, %25 : vector<24x128xf32>
    %27 = arith.addf %24, %26 : vector<24x128xf32>
    %c0_17 = arith.constant 0 : index
    %c0_18 = arith.constant 0 : index
    %c0_19 = arith.constant 0 : index
    %28 = vector.load %arg7[%c0_17, %c0_18, %c0_19] : memref<1x24x128xf32, #tpu.memory_space<vmem>>, vector<1x24x128xf32>
    %29 = vector.shape_cast %28 : vector<1x24x128xf32> to vector<24x128xf32>
    %30 = vector.shape_cast %27 : vector<24x128xf32> to vector<1x24x128xf32>
    tpu.vector_store %arg7[%c0_17, %c0_18, %c0_19], %30 {strides = array<i32>} : memref<1x24x128xf32, #tpu.memory_space<vmem>>, vector<1x24x128xf32>,
    return
  }
  func.func @transform_0(%arg0: i32, %arg1: i32) -> (i32, i32) {
    %c0_i32 = arith.constant 0 : i32
    %c0_i32_0 = arith.constant 0 : i32
    %c0_i32_1 = arith.constant 0 : i32
    return %c0_i32, %c0_i32_0 : i32, i32
  }
  func.func @transform_1(%arg0: i32, %arg1: i32) -> (i32, i32) {
    %c0_i32 = arith.constant 0 : i32
    %c0_i32_0 = arith.constant 0 : i32
    %c0_i32_1 = arith.constant 0 : i32
    return %c0_i32, %c0_i32_0 : i32, i32
  }
  func.func @transform_2(%arg0: i32, %arg1: i32) -> (i32, i32) {
    %c0_i32 = arith.constant 0 : i32
    %c0_i32_0 = arith.constant 0 : i32
    return %c0_i32, %arg1 : i32, i32
  }
  func.func @transform_3(%arg0: i32, %arg1: i32) -> (i32, i32, i32) {
    %c0_i32 = arith.constant 0 : i32
    %c0_i32_0 = arith.constant 0 : i32
    return %arg0, %c0_i32, %arg1 : i32, i32, i32
  }
  func.func @transform_4(%arg0: i32, %arg1: i32) -> (i32, i32, i32) {
    %c0_i32 = arith.constant 0 : i32
    %c0_i32_0 = arith.constant 0 : i32
    return %arg0, %c0_i32, %arg1 : i32, i32, i32
  }
  func.func @transform_5(%arg0: i32, %arg1: i32) -> (i32, i32, i32) {
    %c0_i32 = arith.constant 0 : i32
    %c0_i32_0 = arith.constant 0 : i32
    return %arg0, %c0_i32, %arg1 : i32, i32, i32
  }
}

module attributes {stable_mosaic.version = 11 : i64} {
  func.func @kernel(%arg0: i32, %arg1: i32, %arg2: memref<24x8xbf16, #tpu.memory_space<vmem>>, %arg3: memref<24x8xf32, #tpu.memory_space<vmem>>, %arg4: memref<8x256xf32, #tpu.memory_space<vmem>>, %arg5: memref<1x8x256xbf16, #tpu.memory_space<vmem>>, %arg6: memref<1x24x256xbf16, #tpu.memory_space<vmem>>, %arg7: memref<1x24x256xf32, #tpu.memory_space<vmem>>) attributes {dimension_semantics = [#tpu.dimension_semantics<parallel>, #tpu.dimension_semantics<parallel>], iteration_bounds = array<i64: 2, 1>, scalar_prefetch = 0 : i64, scratch_operands = 0 : i64, tpu.core_type = #tpu.core_type<tc>, window_params = [{pipeline_mode = #tpu.pipeline_mode<synchronous>, transform_indices = @transform_0, window_bounds = array<i64: 24, 8>}, {pipeline_mode = #tpu.pipeline_mode<synchronous>, transform_indices = @transform_1, window_bounds = array<i64: 24, 8>}, {transform_indices = @transform_2, window_bounds = array<i64: 8, 256>}, {transform_indices = @transform_3, window_bounds = array<i64: 1, 8, 256>}, {transform_indices = @transform_4, window_bounds = array<i64: 1, 24, 256>}, {transform_indices = @transform_5, window_bounds = array<i64: 1, 24, 256>}]} {
    %c0 = arith.constant 0 : index
    %c0_0 = arith.constant 0 : index
    %0 = vector.load %arg2[%c0, %c0_0] : memref<24x8xbf16, #tpu.memory_space<vmem>>, vector<24x8xbf16>
    %c0_1 = arith.constant 0 : index
    %c0_2 = arith.constant 0 : index
    %c0_3 = arith.constant 0 : index
    %1 = vector.load %arg5[%c0_1, %c0_2, %c0_3] : memref<1x8x256xbf16, #tpu.memory_space<vmem>>, vector<1x8x256xbf16>
    %2 = vector.shape_cast %1 : vector<1x8x256xbf16> to vector<8x256xbf16>
    %cst = arith.constant dense<0.000000e+00> : vector<24x256xf32>
    %3 = tpu.matmul %0, %2, %cst {dimension_numbers = #tpu.dot_dimension_numbers<[1], [0], [0], [1], [0, 0, 1, 1], [], []>} : vector<24x8xbf16>, vector<8x256xbf16>, vector<24x256xf32> -> vector<24x256xf32>
    %c0_4 = arith.constant 0 : index
    %c3 = arith.constant 3 : index
    %4 = vector.load %arg3[%c0_4, %c3] : memref<24x8xf32, #tpu.memory_space<vmem>>, vector<24x1xf32>
    %5 = vector.broadcast %4 : vector<24x1xf32> to vector<24x256xf32>
    %6 = arith.addf %3, %5 : vector<24x256xf32>
    %7 = arith.truncf %6 : vector<24x256xf32> to vector<24x256xbf16>
    %c0_5 = arith.constant 0 : index
    %c0_6 = arith.constant 0 : index
    %c0_7 = arith.constant 0 : index
    %8 = vector.load %arg6[%c0_5, %c0_6, %c0_7] : memref<1x24x256xbf16, #tpu.memory_space<vmem>>, vector<1x24x256xbf16>
    %9 = vector.shape_cast %8 : vector<1x24x256xbf16> to vector<24x256xbf16>
    %10 = vector.shape_cast %7 : vector<24x256xbf16> to vector<1x24x256xbf16>
    tpu.vector_store %arg6[%c0_5, %c0_6, %c0_7], %10 {strides = array<i32>} : memref<1x24x256xbf16, #tpu.memory_space<vmem>>, vector<1x24x256xbf16>,
    %cst_8 = arith.constant 5.000000e-01 : f32
    %11 = vector.broadcast %cst_8 : f32 to vector<24x256xf32>
    %12 = arith.mulf %6, %11 : vector<24x256xf32>
    %13 = math.tanh %12 : vector<24x256xf32>
    %c0_9 = arith.constant 0 : index
    %c0_10 = arith.constant 0 : index
    %14 = vector.load %arg3[%c0_9, %c0_10] : memref<24x8xf32, #tpu.memory_space<vmem>>, vector<24x8xf32>
    %c0_11 = arith.constant 0 : index
    %c0_12 = arith.constant 0 : index
    %15 = vector.load %arg4[%c0_11, %c0_12] : memref<8x256xf32, #tpu.memory_space<vmem>>, vector<8x256xf32>
    %cst_13 = arith.constant dense<0.000000e+00> : vector<24x256xf32>
    %16 = tpu.matmul %14, %15, %cst_13 {dimension_numbers = #tpu.dot_dimension_numbers<[1], [0], [0], [1], [0, 0, 1, 1], [], []>} : vector<24x8xf32>, vector<8x256xf32>, vector<24x256xf32> -> vector<24x256xf32>
    %c0_14 = arith.constant 0 : index
    %c4 = arith.constant 4 : index
    %17 = vector.load %arg3[%c0_14, %c4] : memref<24x8xf32, #tpu.memory_space<vmem>>, vector<24x1xf32>
    %c0_15 = arith.constant 0 : index
    %c5 = arith.constant 5 : index
    %18 = vector.load %arg3[%c0_15, %c5] : memref<24x8xf32, #tpu.memory_space<vmem>>, vector<24x1xf32>
    %c0_16 = arith.constant 0 : index
    %c6 = arith.constant 6 : index
    %19 = vector.load %arg3[%c0_16, %c6] : memref<24x8xf32, #tpu.memory_space<vmem>>, vector<24x1xf32>
    %20 = vector.broadcast %18 : vector<24x1xf32> to vector<24x256xf32>
    %21 = arith.mulf %20, %13 : vector<24x256xf32>
    %22 = vector.broadcast %17 : vector<24x1xf32> to vector<24x256xf32>
    %23 = arith.addf %22, %21 : vector<24x256xf32>
    %24 = arith.mulf %13, %23 : vector<24x256xf32>
    %25 = vector.broadcast %19 : vector<24x1xf32> to vector<24x256xf32>
    %26 = arith.addf %16, %25 : vector<24x256xf32>
    %27 = arith.addf %24, %26 : vector<24x256xf32>
    %c0_17 = arith.constant 0 : index
    %c0_18 = arith.constant 0 : index
    %c0_19 = arith.constant 0 : index
    %28 = vector.load %arg7[%c0_17, %c0_18, %c0_19] : memref<1x24x256xf32, #tpu.memory_space<vmem>>, vector<1x24x256xf32>
    %29 = vector.shape_cast %28 : vector<1x24x256xf32> to vector<24x256xf32>
    %30 = vector.shape_cast %27 : vector<24x256xf32> to vector<1x24x256xf32>
    tpu.vector_store %arg7[%c0_17, %c0_18, %c0_19], %30 {strides = array<i32>} : memref<1x24x256xf32, #tpu.memory_space<vmem>>, vector<1x24x256xf32>,
    return
  }
  func.func @transform_0(%arg0: i32, %arg1: i32) -> (i32, i32) {
    %c0_i32 = arith.constant 0 : i32
    %c0_i32_0 = arith.constant 0 : i32
    %c0_i32_1 = arith.constant 0 : i32
    return %c0_i32, %c0_i32_0 : i32, i32
  }
  func.func @transform_1(%arg0: i32, %arg1: i32) -> (i32, i32) {
    %c0_i32 = arith.constant 0 : i32
    %c0_i32_0 = arith.constant 0 : i32
    %c0_i32_1 = arith.constant 0 : i32
    return %c0_i32, %c0_i32_0 : i32, i32
  }
  func.func @transform_2(%arg0: i32, %arg1: i32) -> (i32, i32) {
    %c0_i32 = arith.constant 0 : i32
    %c0_i32_0 = arith.constant 0 : i32
    return %c0_i32, %arg1 : i32, i32
  }
  func.func @transform_3(%arg0: i32, %arg1: i32) -> (i32, i32, i32) {
    %c0_i32 = arith.constant 0 : i32
    %c0_i32_0 = arith.constant 0 : i32
    return %arg0, %c0_i32, %arg1 : i32, i32, i32
  }
  func.func @transform_4(%arg0: i32, %arg1: i32) -> (i32, i32, i32) {
    %c0_i32 = arith.constant 0 : i32
    %c0_i32_0 = arith.constant 0 : i32
    return %arg0, %c0_i32, %arg1 : i32, i32, i32
  }
  func.func @transform_5(%arg0: i32, %arg1: i32) -> (i32, i32, i32) {
    %c0_i32 = arith.constant 0 : i32
    %c0_i32_0 = arith.constant 0 : i32
    return %arg0, %c0_i32, %arg1 : i32, i32, i32
  }
}

module attributes {stable_mosaic.version = 11 : i64} {
  func.func @kernel(%arg0: i32, %arg1: i32, %arg2: memref<24x32xbf16, #tpu.memory_space<vmem>>, %arg3: memref<24x8xf32, #tpu.memory_space<vmem>>, %arg4: memref<8x128xf32, #tpu.memory_space<vmem>>, %arg5: memref<1x32x128xbf16, #tpu.memory_space<vmem>>, %arg6: memref<1x24x128xbf16, #tpu.memory_space<vmem>>, %arg7: memref<1x24x128xf32, #tpu.memory_space<vmem>>) attributes {dimension_semantics = [#tpu.dimension_semantics<parallel>, #tpu.dimension_semantics<parallel>], iteration_bounds = array<i64: 2, 1>, scalar_prefetch = 0 : i64, scratch_operands = 0 : i64, tpu.core_type = #tpu.core_type<tc>, window_params = [{pipeline_mode = #tpu.pipeline_mode<synchronous>, transform_indices = @transform_0, window_bounds = array<i64: 24, 32>}, {pipeline_mode = #tpu.pipeline_mode<synchronous>, transform_indices = @transform_1, window_bounds = array<i64: 24, 8>}, {transform_indices = @transform_2, window_bounds = array<i64: 8, 128>}, {transform_indices = @transform_3, window_bounds = array<i64: 1, 32, 128>}, {transform_indices = @transform_4, window_bounds = array<i64: 1, 24, 128>}, {transform_indices = @transform_5, window_bounds = array<i64: 1, 24, 128>}]} {
    %c0 = arith.constant 0 : index
    %c0_0 = arith.constant 0 : index
    %0 = vector.load %arg2[%c0, %c0_0] : memref<24x32xbf16, #tpu.memory_space<vmem>>, vector<24x32xbf16>
    %c0_1 = arith.constant 0 : index
    %c0_2 = arith.constant 0 : index
    %c0_3 = arith.constant 0 : index
    %1 = vector.load %arg5[%c0_1, %c0_2, %c0_3] : memref<1x32x128xbf16, #tpu.memory_space<vmem>>, vector<1x32x128xbf16>
    %2 = vector.shape_cast %1 : vector<1x32x128xbf16> to vector<32x128xbf16>
    %cst = arith.constant dense<0.000000e+00> : vector<24x128xf32>
    %3 = tpu.matmul %0, %2, %cst {dimension_numbers = #tpu.dot_dimension_numbers<[1], [0], [0], [1], [0, 0, 1, 1], [], []>} : vector<24x32xbf16>, vector<32x128xbf16>, vector<24x128xf32> -> vector<24x128xf32>
    %c0_4 = arith.constant 0 : index
    %c3 = arith.constant 3 : index
    %4 = vector.load %arg3[%c0_4, %c3] : memref<24x8xf32, #tpu.memory_space<vmem>>, vector<24x1xf32>
    %5 = vector.broadcast %4 : vector<24x1xf32> to vector<24x128xf32>
    %6 = arith.addf %3, %5 : vector<24x128xf32>
    %7 = arith.truncf %6 : vector<24x128xf32> to vector<24x128xbf16>
    %c0_5 = arith.constant 0 : index
    %c0_6 = arith.constant 0 : index
    %c0_7 = arith.constant 0 : index
    %8 = vector.load %arg6[%c0_5, %c0_6, %c0_7] : memref<1x24x128xbf16, #tpu.memory_space<vmem>>, vector<1x24x128xbf16>
    %9 = vector.shape_cast %8 : vector<1x24x128xbf16> to vector<24x128xbf16>
    %10 = vector.shape_cast %7 : vector<24x128xbf16> to vector<1x24x128xbf16>
    tpu.vector_store %arg6[%c0_5, %c0_6, %c0_7], %10 {strides = array<i32>} : memref<1x24x128xbf16, #tpu.memory_space<vmem>>, vector<1x24x128xbf16>,
    %cst_8 = arith.constant 5.000000e-01 : f32
    %11 = vector.broadcast %cst_8 : f32 to vector<24x128xf32>
    %12 = arith.mulf %6, %11 : vector<24x128xf32>
    %13 = math.tanh %12 : vector<24x128xf32>
    %c0_9 = arith.constant 0 : index
    %c0_10 = arith.constant 0 : index
    %14 = vector.load %arg3[%c0_9, %c0_10] : memref<24x8xf32, #tpu.memory_space<vmem>>, vector<24x8xf32>
    %c0_11 = arith.constant 0 : index
    %c0_12 = arith.constant 0 : index
    %15 = vector.load %arg4[%c0_11, %c0_12] : memref<8x128xf32, #tpu.memory_space<vmem>>, vector<8x128xf32>
    %cst_13 = arith.constant dense<0.000000e+00> : vector<24x128xf32>
    %16 = tpu.matmul %14, %15, %cst_13 {dimension_numbers = #tpu.dot_dimension_numbers<[1], [0], [0], [1], [0, 0, 1, 1], [], []>} : vector<24x8xf32>, vector<8x128xf32>, vector<24x128xf32> -> vector<24x128xf32>
    %c0_14 = arith.constant 0 : index
    %c4 = arith.constant 4 : index
    %17 = vector.load %arg3[%c0_14, %c4] : memref<24x8xf32, #tpu.memory_space<vmem>>, vector<24x1xf32>
    %c0_15 = arith.constant 0 : index
    %c5 = arith.constant 5 : index
    %18 = vector.load %arg3[%c0_15, %c5] : memref<24x8xf32, #tpu.memory_space<vmem>>, vector<24x1xf32>
    %c0_16 = arith.constant 0 : index
    %c6 = arith.constant 6 : index
    %19 = vector.load %arg3[%c0_16, %c6] : memref<24x8xf32, #tpu.memory_space<vmem>>, vector<24x1xf32>
    %20 = vector.broadcast %18 : vector<24x1xf32> to vector<24x128xf32>
    %21 = arith.mulf %20, %13 : vector<24x128xf32>
    %22 = vector.broadcast %17 : vector<24x1xf32> to vector<24x128xf32>
    %23 = arith.addf %22, %21 : vector<24x128xf32>
    %24 = arith.mulf %13, %23 : vector<24x128xf32>
    %25 = vector.broadcast %19 : vector<24x1xf32> to vector<24x128xf32>
    %26 = arith.addf %16, %25 : vector<24x128xf32>
    %27 = arith.addf %24, %26 : vector<24x128xf32>
    %c0_17 = arith.constant 0 : index
    %c0_18 = arith.constant 0 : index
    %c0_19 = arith.constant 0 : index
    %28 = vector.load %arg7[%c0_17, %c0_18, %c0_19] : memref<1x24x128xf32, #tpu.memory_space<vmem>>, vector<1x24x128xf32>
    %29 = vector.shape_cast %28 : vector<1x24x128xf32> to vector<24x128xf32>
    %30 = vector.shape_cast %27 : vector<24x128xf32> to vector<1x24x128xf32>
    tpu.vector_store %arg7[%c0_17, %c0_18, %c0_19], %30 {strides = array<i32>} : memref<1x24x128xf32, #tpu.memory_space<vmem>>, vector<1x24x128xf32>,
    return
  }
  func.func @transform_0(%arg0: i32, %arg1: i32) -> (i32, i32) {
    %c0_i32 = arith.constant 0 : i32
    %c0_i32_0 = arith.constant 0 : i32
    %c0_i32_1 = arith.constant 0 : i32
    return %c0_i32, %c0_i32_0 : i32, i32
  }
  func.func @transform_1(%arg0: i32, %arg1: i32) -> (i32, i32) {
    %c0_i32 = arith.constant 0 : i32
    %c0_i32_0 = arith.constant 0 : i32
    %c0_i32_1 = arith.constant 0 : i32
    return %c0_i32, %c0_i32_0 : i32, i32
  }
  func.func @transform_2(%arg0: i32, %arg1: i32) -> (i32, i32) {
    %c0_i32 = arith.constant 0 : i32
    %c0_i32_0 = arith.constant 0 : i32
    return %c0_i32, %arg1 : i32, i32
  }
  func.func @transform_3(%arg0: i32, %arg1: i32) -> (i32, i32, i32) {
    %c0_i32 = arith.constant 0 : i32
    %c0_i32_0 = arith.constant 0 : i32
    return %arg0, %c0_i32, %arg1 : i32, i32, i32
  }
  func.func @transform_4(%arg0: i32, %arg1: i32) -> (i32, i32, i32) {
    %c0_i32 = arith.constant 0 : i32
    %c0_i32_0 = arith.constant 0 : i32
    return %arg0, %c0_i32, %arg1 : i32, i32, i32
  }
  func.func @transform_5(%arg0: i32, %arg1: i32) -> (i32, i32, i32) {
    %c0_i32 = arith.constant 0 : i32
    %c0_i32_0 = arith.constant 0 : i32
    return %arg0, %c0_i32, %arg1 : i32, i32, i32
  }
}

</mosaic_0001>

<bundles_post_ra>
// kernel: detect_forward.4
= control target key start
LH: loop header
LB: loop body
LE: loop exit
PB: predicated region body
PF: predicated region fallthrough
CT: control target
= control target key end

     0   :  { %s865_s18 = smov 0   ;;  %s867_s19 = smov 0   ;;  %s932_s0 = inlined_call_operand.vmem [shape: bf16[24,16], index: 0, kind: input, shape index: {}]   ;;  %s933_s1 = inlined_call_operand.vmem [shape: f32[24,8], index: 1, kind: input, shape index: {}]   ;;  %s934_s2 = inlined_call_operand.vmem [shape: f32[8,128], index: 2, kind: input, shape index: {}]   ;;  %s935_s3 = inlined_call_operand.vmem [shape: bf16[2,16,128], index: 3, kind: input, shape index: {}]   ;;  %s936_s4 = inlined_call_operand.vmem [shape: bf16[2,24,128], index: 4, kind: output, shape index: {0}]   ;;  %s937_s5 = inlined_call_operand.vmem [shape: f32[2,24,128], index: 5, kind: output, shape index: {1}]  }
   0x1   :  { %s869_s20 = smov 0  }
   0x2 LB: > { %s28_s21 = sadd.s32 1, %s823_s19  ;;  %p705_p0 = scmp.ge.s32.totalorder %s827_s20, 1  ;;  %s827_s20 = sphi %s869_s20, %s16_s20   ;;  %s823_s19 = sphi %s867_s19, %s939_s19   ;;  %s819_s18 = sphi %s865_s18, %s938_s18  }
   0x3   : > { %p30_p1 = scmp.ge.s32.totalorder %s28_s21, 2  ;;  %p220_p2 = scmp.lt.s32.totalorder %s827_s20, 3 }
   0x5   : > { %s941_s21 = smov (%p30_p1, %s28_s21), 0  ;;  %p221_p3 = pnand %p705_p0, %p220_p2 }
   0x6   : > { %p270_p4 = scmp.lt.s32.totalorder (!%p221_p3), %s819_s18, 1  ;;  %v797_v0 = vld [vmem:[%s932_s0] sm:$0xff] (!%p221_p3)   ;;  %vm332_vm0 = vcmask (!%p221_p3), 130048   ;;  %v829_v1 = vmov (!%p221_p3), 0.0   ;;  %vm461_vm1 = vcmask (!%p221_p3), 64512   ;;  %vm830_vm2 = vmmov (!%p221_p3), 0  }
   0x7   : > { %224 = sbr.rel (%p221_p3) target bundleno = 261 (0x105), region = 36  ;;  %741 = vmatprep.mubr.msk.bf16.mxu0 (!%p221_p3), %vm332_vm0, %v797_v0  ;;  %745 = vmatprep.subr.mxu1 (!%p221_p3), %v829_v1  ;;  %v412_v2 = vld [vmem:[%s934_s2] sm:$0xff] (!%p221_p3)  ;;  %v411_v4 = vld [vmem:[%s933_s1 + $0x10] sm:$0xff] (!%p221_p3)  ;;  %v831_v5 = vmov (!%p221_p3), 3   ;;  %v410_v6 = vld [vmem:[%s933_s1 + $0x8] sm:$0xff] (!%p221_p3)  ;;  %v832_v9 = vmov (!%p221_p3), 5  }
   0x8   : > { %v409_v3 = vld [vmem:[%s933_s1] sm:$0xff] (!%p221_p3)  ;;  %746 = vmatpush3.msra.mxu1 (!%p221_p3), %v412_v2  ;;  %747 = vmatprep.mubr.msk.f32.mxu1 (!%p221_p3), %vm830_vm2, %v829_v1  ;;  %v798_v8 = vld [vmem:[%s932_s0 + $0x8] ss:$0 sps:$4 sm:$0xff] (!%p221_p3)   ;;  %v833_v10 = vmov (!%p221_p3), 4   ;;  %v834_v11 = vmov (!%p221_p3), 6  }
   0x9   : > { %748 = vmatmul.mubr.msk.f32.vlgmr.msra.gmra.mrb[0].mxu1 (!%p221_p3), %vm461_vm1, %v409_v3  ;;  %789 = vset.pattern.permute.xlu1 (!%p221_p3), %v831_v5 }
   0xa   : > { %750 = vmatprep.mubr.msk.f32.mxu1 (!%p221_p3), %vm830_vm2, %v829_v1  ;;  %315 = vperm.xlu1 (!%p221_p3), %789, %v411_v4  }
   0xb   : > { %788 = vset.pattern.permute.xlu0 (!%p221_p3), %v831_v5 }
   0xc   : > { %305 = vperm.xlu0 (!%p221_p3), %788, %v409_v3  }
   0xd   : > { %751 = vmatmul.mubr.msk.f32.gmra.mrb[2].mxu1 (!%p221_p3), %vm461_vm1, %v410_v6 }
   0xe   : > { %s943_s18 = smov (!%p270_p4, %s819_s18), 1  ;;  %753 = vmatprep.mubr.msk.f32.mxu1 %vm830_vm2, %v829_v1  ;;  %790 = vset.pattern.permute.xlu1 %v832_v9 }
   0xf   : > { %s723_s28 = sshll.u32 %s943_s18, 3  ;;  %415 = vperm.xlu1 %790, %v409_v3   ;;  %s756_s13 = smul.u32 12, %s943_s18 }
  0x10   : > { %s277_s8 = scalar_lea.vmem %s935_s3, %s723_s28  ;;  %310 = vperm.xlu0 %788, %v410_v6   ;;  %s757_s17 = smul.u32 24, %s943_s18 }
  0x11   : > { %v796_v7 = vld [vmem:[%s277_s8] sm:$0xff]   ;;  %754 = vmatmul.mubr.msk.f32.gmra.mrb[4].mxu1 %vm461_vm1, %v411_v4  ;;  %s285_s16 = scalar_lea.vmem %s936_s4, %s756_s13 }
  0x12   : > { %739 = vmatprep.subr.bf16.mxu0 %v796_v7  ;;  %s293_s24 = scalar_lea.vmem %s937_s5, %s757_s17 }
  0x13   : > { %740 = vmatpush3.bf16.msra.mxu0 %v796_v7  ;;  %425 = vperm.xlu1 %790, %v411_v4  }
  0x14   : > { %791 = vset.pattern.permute.xlu0 %v832_v9 }
  0x15   : > { %420 = vperm.xlu0 %791, %v410_v6  }
  0x16   : > { %742 = vmatmul.mubr.msk.bf16.vlgmr.msra.gmra.mrb[0].mxu0 %vm332_vm0, %v798_v8 }
  0x17   : > { %792 = vset.pattern.permute.xlu1 %v833_v10 }
  0x18   : > { %432 = vperm.xlu1 %792, %v409_v3  }
  0x19   : > { %793 = vset.pattern.permute.xlu0 %v833_v10 }
  0x1a   : > { %436 = vperm.xlu0 %793, %v410_v6  }
  0x1c   : > { %440 = vperm.xlu1 %792, %v411_v4  }
  0x1e   : > { %795 = vset.pattern.permute.xlu0 %v834_v11 }
  0x1f   : > { %454 = vperm.xlu0 %795, %v410_v6  }
  0x20   : > { %794 = vset.pattern.permute.xlu1 %v834_v11 }
  0x21   : > { %450 = vperm.xlu1 %794, %v409_v3  }
  0x25   : > { %458 = vperm.xlu1 %794, %v411_v4  }
  0x89   : > { %v316_v12 = vpop.permute.xlu1 %315 }
  0x8b   : > { %v306_v17 = vpop.permute.xlu0 %305 }
  0x8e   : > { %v416_v13 = vpop.permute.xlu1 %415 }
  0x8f   : > { %v311_v26 = vpop.permute.xlu0 %310 }
  0x92   : > { %v426_v14 = vpop.permute.xlu1 %425 }
  0x94   : > { %v421_v37 = vpop.permute.xlu0 %420 }
  0x97   : > { %v433_v19 = vpop.permute.xlu1 %432 }
  0x99   : > { %v437_v39 = vpop.permute.xlu0 %436 }
  0x9b   : > { %v441_v32 = vpop.permute.xlu1 %440 }
  0x9e   : > { %v455_v51 = vpop.permute.xlu0 %454 }
  0xa0   : > { %v451_v38 = vpop.permute.xlu1 %450 }
  0xa4   : > { %v459_v41 = vpop.permute.xlu1 %458 }
  0xdc   : > { %v534_v15 = vpop.f32.mrb[0].mxu1 }
  0xdd   : > { %v749_v16 = vpop.f32.mrb[1].mxu1  ;;  %v535_v53 = vadd.f32 %v534_v15, %v451_v38 }
  0xe0   : > { %v539_v18 = vpop.f32.mrb[2].mxu1 }
  0xe1   : > { %v752_v20 = vpop.f32.mrb[3].mxu1  ;;  %v540_v58 = vadd.f32 %v539_v18, %v455_v51 }
  0xe4   : > { %v544_v22 = vpop.f32.mrb[4].mxu1 }
  0xe5   : > { %v755_v25 = vpop.f32.mrb[5].mxu1  ;;  %v545_v47 = vadd.f32 %v544_v22, %v459_v41 }
  0xe9   : > { %v743_v21 = vpop.f32.mrb[0].mxu0 }
  0xea   : > { %v382_v23 = vadd.f32 %v743_v21, %v316_v12  ;;  %v373_v24 = vpop.f32.mrb[1].mxu0 }
  0xeb   : > { %v374_v27 = vadd.f32 %v373_v24, %v306_v17  ;;  %v744_v28 = vpop.f32.mrb[2].mxu0 }
  0xec   : > { %v726_v29 = vpack.c.bf16 %v382_v23, %v382_v23  ;;  %v405_v30 = vmul.f32 0.5, %v382_v23  ;;  %v376_v31 = vpop.f32.mrb[3].mxu0 }
  0xed   : > { %v403_v33 = vmul.f32 0.5, %v374_v27  ;;  %v377_v34 = vadd.f32 %v376_v31, %v311_v26 }
  0xee   : > { %402 = vst [vmem:[%s285_s16 + $0x8] sm:$0xf] %v726_v29  ;;  %799 = vtanh.f32 %v405_v30 }
  0xef   : > { %801 = vtanh.f32 %v403_v33  ;;  %v730_v35 = vpack.c.bf16 %v377_v34, %v374_v27  ;;  %v404_v36 = vmul.f32 0.5, %v377_v34 }
  0xf1   : > { %731 = vst [vmem:[%s285_s16] sm:$0xff] %v730_v35   ;;  %803 = vtanh.f32 %v404_v36 }
  0xf8   : > { %v800_v40 = vpop.eup %799 }
  0xf9   : > { %v802_v42 = vpop.eup %801  ;;  %v430_v43 = vmul.f32 %v800_v40, %v426_v14 }
  0xfa   : > { %v428_v44 = vmul.f32 %v802_v42, %v416_v13 }
  0xfb   : > { %v804_v45 = vpop.eup %803  ;;  %v445_v46 = vadd.f32 %v441_v32, %v430_v43 }
  0xfc   : > { %v443_v48 = vadd.f32 %v433_v19, %v428_v44  ;;  %v429_v49 = vmul.f32 %v804_v45, %v421_v37 }
  0xfd   : > { %v448_v50 = vmul.f32 %v800_v40, %v445_v46 }
  0xfe   : > { %v446_v52 = vmul.f32 %v802_v42, %v443_v48  ;;  %v444_v54 = vadd.f32 %v437_v39, %v429_v49 }
  0xff   : > { %v550_v55 = vadd.f32 %v545_v47, %v448_v50 }
 0x100   : > { %v548_v56 = vadd.f32 %v535_v53, %v446_v52  ;;  %v447_v57 = vmul.f32 %v804_v45, %v444_v54 }
 0x101   : > { %553 = vst [vmem:[%s293_s24 + $0x10] sm:$0xff] %v550_v55 }
 0x102   : > { %551 = vst [vmem:[%s293_s24] sm:$0xff] %v548_v56  ;;  %v549_v59 = vadd.f32 %v540_v58, %v447_v57 }
 0x104   : > { %552 = vst [vmem:[%s293_s24 + $0x8] sm:$0xff] %v549_v59 }
 0x105 PF: > { %s16_s20 = sadd.s32 1, %s827_s20   ;;  %s938_s18 = smov %s823_s19 }
 0x106   : > { %p13_p5 = scmp.ge.s32.totalorder %s16_s20, 4   ;;  %s939_s19 = smov %s941_s21 }
 0x108   :  { %15 = sbr.rel (!%p13_p5) target bundleno = 2 (0x2), region = 81 }

// kernel: detect_forward.3
= control target key start
LH: loop header
LB: loop body
LE: loop exit
PB: predicated region body
PF: predicated region fallthrough
CT: control target
= control target key end

     0   :  { %s906_s18 = smov 0   ;;  %s908_s19 = smov 0   ;;  %s986_s0 = inlined_call_operand.vmem [shape: bf16[24,8], index: 0, kind: input, shape index: {}]   ;;  %s987_s1 = inlined_call_operand.vmem [shape: f32[24,8], index: 1, kind: input, shape index: {}]   ;;  %s988_s2 = inlined_call_operand.vmem [shape: f32[8,256], index: 2, kind: input, shape index: {}]   ;;  %s989_s3 = inlined_call_operand.vmem [shape: bf16[2,8,256], index: 3, kind: input, shape index: {}]   ;;  %s990_s4 = inlined_call_operand.vmem [shape: bf16[2,24,256], index: 4, kind: output, shape index: {0}]   ;;  %s991_s5 = inlined_call_operand.vmem [shape: f32[2,24,256], index: 5, kind: output, shape index: {1}]  }
   0x1   :  { %s910_s20 = smov 0  }
   0x2 LB: > { %s28_s21 = sadd.s32 1, %s864_s19  ;;  %p766_p0 = scmp.ge.s32.totalorder %s868_s20, 1  ;;  %s868_s20 = sphi %s910_s20, %s16_s20   ;;  %s864_s19 = sphi %s908_s19, %s993_s19   ;;  %s860_s18 = sphi %s906_s18, %s992_s18  }
   0x3   : > { %p30_p1 = scmp.ge.s32.totalorder %s28_s21, 2  ;;  %p224_p2 = scmp.lt.s32.totalorder %s868_s20, 3 }
   0x5   : > { %s995_s21 = smov (%p30_p1, %s28_s21), 0  ;;  %p225_p3 = pnand %p766_p0, %p224_p2 }
   0x6   : > { %p281_p4 = scmp.lt.s32.totalorder (!%p225_p3), %s860_s18, 1  ;;  %v870_v0 = vmov (!%p225_p3), 0   ;;  %v450_v1 = vld [vmem:[%s988_s2 + $0x8] sm:$0xff] (!%p225_p3)  ;;  %v449_v2 = vld [vmem:[%s988_s2] sm:$0xff] (!%p225_p3)  ;;  %vm346_vm0 = vcmask (!%p225_p3), 64512   ;;  %v871_v4 = vmov (!%p225_p3), 0.0  }
   0x7   : > { %228 = sbr.rel (%p225_p3) target bundleno = 269 (0x10d), region = 36  ;;  %392 = vmatprep.mubr.bf16.mxu0 (!%p225_p3), %v870_v0  ;;  %514 = vmatprep.subr.mxu1 (!%p225_p3), %v450_v1  ;;  %v446_v3 = vld [vmem:[%s987_s1] sm:$0xff] (!%p225_p3)  ;;  %v448_v5 = vld [vmem:[%s987_s1 + $0x10] sm:$0xff] (!%p225_p3)  ;;  %v872_v6 = vmov (!%p225_p3), 3   ;;  %v447_v7 = vld [vmem:[%s987_s1 + $0x8] sm:$0xff] (!%p225_p3)  ;;  %vm353_vm1 = vcmask (!%p225_p3), 1043456  }
   0x8   : > { %515 = vmatpush1.msra.mxu1 (!%p225_p3), %v449_v2  ;;  %578 = vmatprep.mubr.f32.mxu1 (!%p225_p3), %v871_v4  ;;  %v832_v12 = vld [vmem:[%s986_s0] sm:$0xff] (!%p225_p3)   ;;  %v873_v13 = vmov (!%p225_p3), 5   ;;  %v833_v14 = vld [vmem:[%s986_s0 + $0x8] ss:$0 sps:$4 sm:$0xff] (!%p225_p3)   ;;  %v874_v15 = vmov (!%p225_p3), 4   ;;  %v875_v16 = vmov (!%p225_p3), 6  }
   0x9   : > { %781 = vmatmul.mubr.msk.f32.vlgmr.msra.gmra.mrb[0].mxu1 (!%p225_p3), %vm346_vm0, %v446_v3  ;;  %823 = vset.pattern.permute.xlu1 (!%p225_p3), %v872_v6 }
   0xa   : > { %584 = vmatprep.mubr.f32.mxu1 (!%p225_p3), %v871_v4  ;;  %330 = vperm.xlu1 (!%p225_p3), %823, %v448_v5  }
   0xb   : > { %822 = vset.pattern.permute.xlu0 (!%p225_p3), %v872_v6 }
   0xc   : > { %320 = vperm.xlu0 (!%p225_p3), %822, %v446_v3  }
   0xd   : > { %782 = vmatmul.mubr.msk.f32.gmra.mrb[2].mxu1 (!%p225_p3), %vm346_vm0, %v447_v7 }
   0xe   : > { %s997_s18 = smov (!%p281_p4, %s860_s18), 1  ;;  %590 = vmatprep.mubr.f32.mxu1 %v871_v4  ;;  %824 = vset.pattern.permute.xlu1 %v873_v13 }
   0xf   : > { %s786_s28 = sshll.u32 %s997_s18, 3  ;;  %453 = vperm.xlu1 %824, %v446_v3   ;;  %s790_s15 = smul.u32 24, %s997_s18 }
  0x10   : > { %s288_s8 = scalar_lea.vmem %s989_s3, %s786_s28  ;;  %325 = vperm.xlu0 %822, %v447_v7   ;;  %s791_s23 = smul.u32 48, %s997_s18 }
  0x11   : > { %v314_v8 = vld [vmem:[%s288_s8] sm:$0xff]  ;;  %783 = vmatmul.mubr.msk.f32.gmra.mrb[4].mxu1 %vm346_vm0, %v448_v5  ;;  %s298_s22 = scalar_lea.vmem %s990_s4, %s790_s15 }
  0x12   : > { %v774_v9 = vcombine.high %v314_v8, %v314_v8  ;;  %v773_v10 = vcombine.low %v314_v8, %v314_v8  ;;  %s308_s26 = scalar_lea.vmem %s991_s5, %s791_s23 }
  0x13   : > { %463 = vperm.xlu1 %824, %v448_v5  }
  0x14   : > { %775 = vmatprep.subr.msk.bf16.mxu0 %vm353_vm1, %v774_v9  ;;  %v355_v11 = vsel %vm353_vm1, %v773_v10, 0  ;;  %825 = vset.pattern.permute.xlu0 %v873_v13 }
  0x15   : > { %361 = vmatpush1.bf16.msra.mxu0 %v355_v11  ;;  %458 = vperm.xlu0 %825, %v447_v7  }
  0x17   : > { %826 = vset.pattern.permute.xlu1 %v874_v15 }
  0x18   : > { %776 = vmatmul.mubr.msk.bf16.vlgmr.msra.gmra.mrb[0].mxu0 %vm346_vm0, %v832_v12  ;;  %473 = vperm.xlu1 %826, %v446_v3  }
  0x19   : > { %402 = vmatprep.mubr.bf16.mxu0 %v870_v0  ;;  %827 = vset.pattern.permute.xlu0 %v874_v15 }
  0x1a   : > { %477 = vperm.xlu0 %827, %v447_v7  }
  0x1c   : > { %481 = vperm.xlu1 %826, %v448_v5  }
  0x1e   : > { %829 = vset.pattern.permute.xlu0 %v875_v16 }
  0x1f   : > { %501 = vperm.xlu0 %829, %v447_v7  }
  0x20   : > { %777 = vmatmul.mubr.msk.bf16.gmra.mrb[4].mxu0 %vm346_vm0, %v833_v14  ;;  %828 = vset.pattern.permute.xlu1 %v875_v16 }
  0x21   : > { %497 = vperm.xlu1 %828, %v446_v3  }
  0x25   : > { %505 = vperm.xlu1 %828, %v448_v5  }
  0x89   : > { %v331_v17 = vpop.permute.xlu1 %330 }
  0x8b   : > { %v321_v21 = vpop.permute.xlu0 %320 }
  0x8e   : > { %v454_v18 = vpop.permute.xlu1 %453 }
  0x8f   : > { %v326_v25 = vpop.permute.xlu0 %325 }
  0x92   : > { %v958_v24 = vpop.permute.xlu1 %463 }
  0x94   : > { %v459_v41 = vpop.permute.xlu0 %458 }
  0x97   : > { %v474_v36 = vpop.permute.xlu1 %473 }
  0x99   : > { %v478_v52 = vpop.permute.xlu0 %477 }
  0x9b   : > { %v482_v47 = vpop.permute.xlu1 %481 }
  0x9e   : > { %v502_v61 = vpop.permute.xlu0 %501 }
  0xa0   : > { %v498_v56 = vpop.permute.xlu1 %497 }
  0xdc   : > { %v580_v19 = vpop.f32.mrb[0].mxu1 }
  0xdd   : > { %v582_v20 = vpop.f32.mrb[1].mxu1  ;;  %v581_v1 = vadd.f32 %v580_v19, %v498_v56 }
  0xde   : > { %v583_v4 = vadd.f32 %v582_v20, %v498_v56 }
  0xe0   : > { %v586_v22 = vpop.f32.mrb[2].mxu1 }
  0xe1   : > { %v956_v23 = vpop.f32.mrb[3].mxu1  ;;  %v587_v7 = vadd.f32 %v586_v22, %v502_v61 }
  0xe2   : > { %v589_v10 = vadd.f32 %v956_v23, %v502_v61 }
  0xe4   : > { %v961_v26 = vpop.f32.mrb[4].mxu1 }
  0xe5   : > { %v963_v28 = vpop.f32.mrb[5].mxu1 }
  0xeb   : > { %v394_v27 = vpop.f32.mrb[0].mxu0 }
  0xec   : > { %v395_v29 = vadd.f32 %v394_v27, %v321_v21  ;;  %v396_v30 = vpop.f32.mrb[1].mxu0 }
  0xed   : > { %v397_v31 = vadd.f32 %v396_v30, %v321_v21  ;;  %v398_v32 = vpop.f32.mrb[2].mxu0  ;;  %v506_v21 = vpop.permute.xlu1 %505 }
  0xee   : > { %v434_v33 = vmul.f32 0.5, %v395_v29  ;;  %v399_v34 = vadd.f32 %v398_v32, %v326_v25  ;;  %v400_v35 = vpop.f32.mrb[3].mxu0  ;;  %v593_v27 = vadd.f32 %v961_v26, %v506_v21  ;;  %v595_v30 = vadd.f32 %v963_v28, %v506_v21 }
  0xef   : > { %v787_v37 = vpack.c.bf16 %v397_v31, %v395_v29  ;;  %v435_v38 = vmul.f32 0.5, %v397_v31  ;;  %v401_v39 = vadd.f32 %v400_v35, %v326_v25 }
  0xf0   : > { %834 = vtanh.f32 %v434_v33  ;;  %v436_v40 = vmul.f32 0.5, %v399_v34 }
  0xf1   : > { %431 = vst [vmem:[%s298_s22] sm:$0xff] %v787_v37  ;;  %836 = vtanh.f32 %v435_v38  ;;  %v788_v42 = vpack.c.bf16 %v401_v39, %v399_v34  ;;  %v437_v43 = vmul.f32 0.5, %v401_v39 }
  0xf2   : > { %838 = vtanh.f32 %v436_v40 }
  0xf3   : > { %432 = vst [vmem:[%s298_s22 + $0x8] sm:$0xff] %v788_v42  ;;  %840 = vtanh.f32 %v437_v43  ;;  %v404_v44 = vpop.f32.mrb[4].mxu0 }
  0xf4   : > { %v405_v45 = vadd.f32 %v404_v44, %v331_v17  ;;  %v406_v46 = vpop.f32.mrb[5].mxu0 }
  0xf5   : > { %v407_v48 = vadd.f32 %v406_v46, %v331_v17  ;;  %v408_v49 = vpop.f32.mrb[6].mxu0 }
  0xf6   : > { %v438_v50 = vmul.f32 0.5, %v405_v45  ;;  %v409_v51 = vpop.f32.mrb[7].mxu0 }
  0xf7   : > { %v789_v53 = vpack.c.bf16 %v407_v48, %v405_v45  ;;  %v439_v54 = vmul.f32 0.5, %v407_v48 }
  0xf8   : > { %842 = vtanh.f32 %v438_v50 }
  0xf9   : > { %433 = vst [vmem:[%s298_s22 + $0x10] sm:$0xff] %v789_v53  ;;  %844 = vtanh.f32 %v439_v54 }
  0xfa   : > { %v835_v55 = vpop.eup %834 }
  0xfb   : > { %v837_v57 = vpop.eup %836  ;;  %v466_v58 = vmul.f32 %v835_v55, %v454_v18 }
  0xfc   : > { %v839_v59 = vpop.eup %838  ;;  %v467_v60 = vmul.f32 %v837_v57, %v454_v18 }
  0xfd   : > { %v841_v62 = vpop.eup %840  ;;  %v484_v63 = vadd.f32 %v474_v36, %v466_v58  ;;  %v468_v0 = vmul.f32 %v839_v59, %v459_v41 }
  0xfe   : > { %v485_v2 = vadd.f32 %v474_v36, %v467_v60  ;;  %v469_v3 = vmul.f32 %v841_v62, %v459_v41 }
  0xff   : > { %v490_v5 = vmul.f32 %v835_v55, %v484_v63  ;;  %v486_v6 = vadd.f32 %v478_v52, %v468_v0 }
 0x100   : > { %v491_v8 = vmul.f32 %v837_v57, %v485_v2  ;;  %v487_v9 = vadd.f32 %v478_v52, %v469_v3 }
 0x101   : > { %v492_v11 = vmul.f32 %v839_v59, %v486_v6  ;;  %v597_v12 = vadd.f32 %v581_v1, %v490_v5 }
 0x102   : > { %v843_v13 = vpop.eup %842  ;;  %v493_v14 = vmul.f32 %v841_v62, %v487_v9  ;;  %v598_v15 = vadd.f32 %v583_v4, %v491_v8 }
 0x103   : > { %v845_v16 = vpop.eup %844  ;;  %v470_v17 = vmul.f32 %v843_v13, %v958_v24  ;;  %603 = vst [vmem:[%s308_s26] sm:$0xff] %v597_v12  ;;  %v599_v18 = vadd.f32 %v587_v7, %v492_v11 }
 0x104   : > { %v471_v19 = vmul.f32 %v845_v16, %v958_v24  ;;  %604 = vst [vmem:[%s308_s26 + $0x8] sm:$0xff] %v598_v15  ;;  %v600_v20 = vadd.f32 %v589_v10, %v493_v14 }
 0x105   : > { %v488_v22 = vadd.f32 %v482_v47, %v470_v17  ;;  %605 = vst [vmem:[%s308_s26 + $0x10] sm:$0xff] %v599_v18 }
 0x106   : > { %v489_v25 = vadd.f32 %v482_v47, %v471_v19  ;;  %606 = vst [vmem:[%s308_s26 + $0x18] sm:$0xff] %v600_v20 }
 0x107   : > { %v494_v23 = vmul.f32 %v843_v13, %v488_v22 }
 0x108   : > { %v495_v29 = vmul.f32 %v845_v16, %v489_v25 }
 0x109   : > { %v601_v31 = vadd.f32 %v593_v27, %v494_v23 }
 0x10a   : > { %v602_v32 = vadd.f32 %v595_v30, %v495_v29 }
 0x10b   : > { %607 = vst [vmem:[%s308_s26 + $0x20] sm:$0xff] %v601_v31 }
 0x10c   : > { %608 = vst [vmem:[%s308_s26 + $0x28] sm:$0xff] %v602_v32 }
 0x10d PF: > { %s16_s20 = sadd.s32 1, %s868_s20   ;;  %s992_s18 = smov %s864_s19 }
 0x10e   : > { %p13_p5 = scmp.ge.s32.totalorder %s16_s20, 4   ;;  %s993_s19 = smov %s995_s21 }
 0x110   :  { %15 = sbr.rel (!%p13_p5) target bundleno = 2 (0x2), region = 81 }

// kernel: detect_forward.5
= control target key start
LH: loop header
LB: loop body
LE: loop exit
PB: predicated region body
PF: predicated region fallthrough
CT: control target
= control target key end

     0   :  { %s878_s18 = smov 0   ;;  %s880_s19 = smov 0   ;;  %s945_s0 = inlined_call_operand.vmem [shape: bf16[24,32], index: 0, kind: input, shape index: {}]   ;;  %s946_s1 = inlined_call_operand.vmem [shape: f32[24,8], index: 1, kind: input, shape index: {}]   ;;  %s947_s2 = inlined_call_operand.vmem [shape: f32[8,128], index: 2, kind: input, shape index: {}]   ;;  %s948_s3 = inlined_call_operand.vmem [shape: bf16[2,32,128], index: 3, kind: input, shape index: {}]   ;;  %s949_s4 = inlined_call_operand.vmem [shape: bf16[2,24,128], index: 4, kind: output, shape index: {0}]   ;;  %s950_s5 = inlined_call_operand.vmem [shape: f32[2,24,128], index: 5, kind: output, shape index: {1}]  }
   0x1   :  { %s882_s20 = smov 0  }
   0x2 LB: > { %s28_s21 = sadd.s32 1, %s836_s19  ;;  %p713_p0 = scmp.ge.s32.totalorder %s840_s20, 1  ;;  %s840_s20 = sphi %s882_s20, %s16_s20   ;;  %s836_s19 = sphi %s880_s19, %s952_s19   ;;  %s832_s18 = sphi %s878_s18, %s951_s18  }
   0x3   : > { %p30_p1 = scmp.ge.s32.totalorder %s28_s21, 2  ;;  %p220_p2 = scmp.lt.s32.totalorder %s840_s20, 3 }
   0x5   : > { %s954_s21 = smov (%p30_p1, %s28_s21), 0  ;;  %p221_p3 = pnand %p713_p0, %p220_p2 }
   0x6   : > { %p270_p4 = scmp.lt.s32.totalorder (!%p221_p3), %s832_s18, 1  ;;  %v810_v0 = vld [vmem:[%s945_s0] sm:$0xff] (!%p221_p3)   ;;  %vm340_vm0 = vcmask (!%p221_p3), 261120   ;;  %v842_v1 = vmov (!%p221_p3), 0.0   ;;  %vm469_vm1 = vcmask (!%p221_p3), 64512   ;;  %vm843_vm2 = vmmov (!%p221_p3), 0  }
   0x7   : > { %224 = sbr.rel (%p221_p3) target bundleno = 265 (0x109), region = 36  ;;  %753 = vmatprep.mubr.msk.bf16.mxu0 (!%p221_p3), %vm340_vm0, %v810_v0  ;;  %757 = vmatprep.subr.mxu1 (!%p221_p3), %v842_v1  ;;  %v420_v2 = vld [vmem:[%s947_s2] sm:$0xff] (!%p221_p3)  ;;  %v419_v4 = vld [vmem:[%s946_s1 + $0x10] sm:$0xff] (!%p221_p3)  ;;  %v844_v5 = vmov (!%p221_p3), 3   ;;  %v418_v6 = vld [vmem:[%s946_s1 + $0x8] sm:$0xff] (!%p221_p3)  ;;  %v845_v9 = vmov (!%p221_p3), 5  }
   0x8   : > { %v417_v3 = vld [vmem:[%s946_s1] sm:$0xff] (!%p221_p3)  ;;  %758 = vmatpush3.msra.mxu1 (!%p221_p3), %v420_v2  ;;  %759 = vmatprep.mubr.msk.f32.mxu1 (!%p221_p3), %vm843_vm2, %v842_v1  ;;  %v811_v10 = vld [vmem:[%s945_s0 + $0x8] ss:$0 sps:$4 sm:$0xff] (!%p221_p3)   ;;  %v846_v11 = vmov (!%p221_p3), 4   ;;  %v847_v12 = vmov (!%p221_p3), 6  }
   0x9   : > { %760 = vmatmul.mubr.msk.f32.vlgmr.msra.gmra.mrb[0].mxu1 (!%p221_p3), %vm469_vm1, %v417_v3  ;;  %801 = vset.pattern.permute.xlu1 (!%p221_p3), %v844_v5 }
   0xa   : > { %762 = vmatprep.mubr.msk.f32.mxu1 (!%p221_p3), %vm843_vm2, %v842_v1  ;;  %317 = vperm.xlu1 (!%p221_p3), %801, %v419_v4  }
   0xb   : > { %800 = vset.pattern.permute.xlu0 (!%p221_p3), %v844_v5 }
   0xc   : > { %307 = vperm.xlu0 (!%p221_p3), %800, %v417_v3  }
   0xd   : > { %763 = vmatmul.mubr.msk.f32.gmra.mrb[2].mxu1 (!%p221_p3), %vm469_vm1, %v418_v6 }
   0xe   : > { %s956_s18 = smov (!%p270_p4, %s832_s18), 1  ;;  %765 = vmatprep.mubr.msk.f32.mxu1 %vm843_vm2, %v842_v1  ;;  %802 = vset.pattern.permute.xlu1 %v845_v9 }
   0xf   : > { %s732_s28 = sshll.u32 %s956_s18, 4  ;;  %423 = vperm.xlu1 %802, %v417_v3   ;;  %s768_s13 = smul.u32 12, %s956_s18 }
  0x10   : > { %s277_s8 = scalar_lea.vmem %s948_s3, %s732_s28  ;;  %312 = vperm.xlu0 %800, %v418_v6   ;;  %s769_s17 = smul.u32 24, %s956_s18 }
  0x11   : > { %v808_v7 = vld [vmem:[%s277_s8] sm:$0xff]   ;;  %v809_v8 = vld [vmem:[%s277_s8 + $0x8] sm:$0xff]   ;;  %766 = vmatmul.mubr.msk.f32.gmra.mrb[4].mxu1 %vm469_vm1, %v419_v4  ;;  %s285_s16 = scalar_lea.vmem %s949_s4, %s768_s13 }
  0x12   : > { %749 = vmatprep.subr.bf16.mxu0 %v808_v7  ;;  %s293_s24 = scalar_lea.vmem %s950_s5, %s769_s17 }
  0x13   : > { %750 = vmatpush3.bf16.msra.mxu0 %v808_v7  ;;  %433 = vperm.xlu1 %802, %v419_v4  }
  0x14   : > { %751 = vmatprep.subr.bf16.mxu0 %v809_v8  ;;  %803 = vset.pattern.permute.xlu0 %v845_v9 }
  0x15   : > { %428 = vperm.xlu0 %803, %v418_v6  }
  0x17   : > { %752 = vmatpush3.bf16.msra.mxu0 %v809_v8  ;;  %804 = vset.pattern.permute.xlu1 %v846_v11 }
  0x18   : > { %440 = vperm.xlu1 %804, %v417_v3  }
  0x19   : > { %805 = vset.pattern.permute.xlu0 %v846_v11 }
  0x1a   : > { %754 = vmatmul.mubr.msk.bf16.vlgmr.msra.gmra.mrb[0].mxu0 %vm340_vm0, %v811_v10  ;;  %444 = vperm.xlu0 %805, %v418_v6  }
  0x1c   : > { %448 = vperm.xlu1 %804, %v419_v4  }
  0x1e   : > { %807 = vset.pattern.permute.xlu0 %v847_v12 }
  0x1f   : > { %462 = vperm.xlu0 %807, %v418_v6  }
  0x20   : > { %806 = vset.pattern.permute.xlu1 %v847_v12 }
  0x21   : > { %458 = vperm.xlu1 %806, %v417_v3  }
  0x25   : > { %466 = vperm.xlu1 %806, %v419_v4  }
  0x89   : > { %v318_v13 = vpop.permute.xlu1 %317 }
  0x8b   : > { %v308_v20 = vpop.permute.xlu0 %307 }
  0x8e   : > { %v424_v14 = vpop.permute.xlu1 %423 }
  0x8f   : > { %v313_v27 = vpop.permute.xlu0 %312 }
  0x92   : > { %v434_v17 = vpop.permute.xlu1 %433 }
  0x94   : > { %v429_v38 = vpop.permute.xlu0 %428 }
  0x97   : > { %v441_v22 = vpop.permute.xlu1 %440 }
  0x99   : > { %v445_v40 = vpop.permute.xlu0 %444 }
  0x9b   : > { %v449_v33 = vpop.permute.xlu1 %448 }
  0x9e   : > { %v463_v52 = vpop.permute.xlu0 %462 }
  0xa0   : > { %v459_v39 = vpop.permute.xlu1 %458 }
  0xa4   : > { %v467_v42 = vpop.permute.xlu1 %466 }
  0xdc   : > { %v542_v15 = vpop.f32.mrb[0].mxu1 }
  0xdd   : > { %v761_v16 = vpop.f32.mrb[1].mxu1  ;;  %v543_v54 = vadd.f32 %v542_v15, %v459_v39 }
  0xe0   : > { %v547_v18 = vpop.f32.mrb[2].mxu1 }
  0xe1   : > { %v764_v19 = vpop.f32.mrb[3].mxu1  ;;  %v548_v59 = vadd.f32 %v547_v18, %v463_v52 }
  0xe4   : > { %v552_v21 = vpop.f32.mrb[4].mxu1 }
  0xe5   : > { %v767_v23 = vpop.f32.mrb[5].mxu1  ;;  %v553_v48 = vadd.f32 %v552_v21, %v467_v42 }
  0xed   : > { %v755_v24 = vpop.f32.mrb[0].mxu0 }
  0xee   : > { %v390_v25 = vadd.f32 %v755_v24, %v318_v13  ;;  %v381_v26 = vpop.f32.mrb[1].mxu0 }
  0xef   : > { %v382_v28 = vadd.f32 %v381_v26, %v308_v20  ;;  %v756_v29 = vpop.f32.mrb[2].mxu0 }
  0xf0   : > { %v735_v30 = vpack.c.bf16 %v390_v25, %v390_v25  ;;  %v413_v31 = vmul.f32 0.5, %v390_v25  ;;  %v384_v32 = vpop.f32.mrb[3].mxu0 }
  0xf1   : > { %v411_v34 = vmul.f32 0.5, %v382_v28  ;;  %v385_v35 = vadd.f32 %v384_v32, %v313_v27 }
  0xf2   : > { %410 = vst [vmem:[%s285_s16 + $0x8] sm:$0xf] %v735_v30  ;;  %812 = vtanh.f32 %v413_v31 }
  0xf3   : > { %814 = vtanh.f32 %v411_v34  ;;  %v739_v36 = vpack.c.bf16 %v385_v35, %v382_v28  ;;  %v412_v37 = vmul.f32 0.5, %v385_v35 }
  0xf5   : > { %740 = vst [vmem:[%s285_s16] sm:$0xff] %v739_v36   ;;  %816 = vtanh.f32 %v412_v37 }
  0xfc   : > { %v813_v41 = vpop.eup %812 }
  0xfd   : > { %v815_v43 = vpop.eup %814  ;;  %v438_v44 = vmul.f32 %v813_v41, %v434_v17 }
  0xfe   : > { %v436_v45 = vmul.f32 %v815_v43, %v424_v14 }
  0xff   : > { %v817_v46 = vpop.eup %816  ;;  %v453_v47 = vadd.f32 %v449_v33, %v438_v44 }
 0x100   : > { %v451_v49 = vadd.f32 %v441_v22, %v436_v45  ;;  %v437_v50 = vmul.f32 %v817_v46, %v429_v38 }
 0x101   : > { %v456_v51 = vmul.f32 %v813_v41, %v453_v47 }
 0x102   : > { %v454_v53 = vmul.f32 %v815_v43, %v451_v49  ;;  %v452_v55 = vadd.f32 %v445_v40, %v437_v50 }
 0x103   : > { %v558_v56 = vadd.f32 %v553_v48, %v456_v51 }
 0x104   : > { %v556_v57 = vadd.f32 %v543_v54, %v454_v53  ;;  %v455_v58 = vmul.f32 %v817_v46, %v452_v55 }
 0x105   : > { %561 = vst [vmem:[%s293_s24 + $0x10] sm:$0xff] %v558_v56 }
 0x106   : > { %559 = vst [vmem:[%s293_s24] sm:$0xff] %v556_v57  ;;  %v557_v60 = vadd.f32 %v548_v59, %v455_v58 }
 0x108   : > { %560 = vst [vmem:[%s293_s24 + $0x8] sm:$0xff] %v557_v60 }
 0x109 PF: > { %s16_s20 = sadd.s32 1, %s840_s20   ;;  %s951_s18 = smov %s836_s19 }
 0x10a   : > { %p13_p5 = scmp.ge.s32.totalorder %s16_s20, 4   ;;  %s952_s19 = smov %s954_s21 }
 0x10c   :  { %15 = sbr.rel (!%p13_p5) target bundleno = 2 (0x2), region = 81 }

</bundles_post_ra>
